<compile_context>
chip_gen: v6e
topology: v6e:2x2x1
jax: 0.10.0
libtpu: 0.0.40
codegen_flags: <defaults>
</compile_context>

<pallas_src>
import jax
import jax.numpy as jnp
from jax.experimental import pallas as pl
from jax.experimental.pallas import tpu as pltpu


def vae_forward_kernel(x_ref, w_enc_ref, b_enc_ref, eps_ref, w_dec_ref, b_dec_ref,
                       recon_ref, mulv_ref):
    two_r = mulv_ref.shape[-1]
    r = two_r // 2

    # Encoder: one fused MXU matmul producing [mu | logvar] (lane-dense, 2R lanes).
    # bf16 operands on the MXU, f32 accumulation.
    enc = jnp.dot(x_ref[...], w_enc_ref[...],
                  preferred_element_type=jnp.float32) + b_enc_ref[...]
    mulv_ref[...] = enc  # single lane-dense (tb, 2R) store; wrapper splits mu / logvar

    # Reparameterize, lane-dense over all 2R lanes:
    #   roll by R aligns logvar under mu's lanes (XLU op);
    #   eps has zeros in lanes [R:2R); the exp argument is zeroed there too, so an
    #   extreme mu can never produce inf * 0 = NaN in the discarded upper lanes.
    rolled = pltpu.roll(enc, shift=r, axis=1)
    lane = jax.lax.broadcasted_iota(jnp.int32, enc.shape, 1)
    std_like = jnp.exp(jnp.where(lane < r, 0.5 * rolled, 0.0))
    z_wide = enc + eps_ref[...] * std_like
    # z_wide[:, :R] = mu + eps * std ; z_wide[:, R:] = logvar (killed by zero weight rows)

    # Decoder: MXU matmul (bf16 operands, f32 acc) + sigmoid, lane-dense D-wide bf16 store.
    logits = jnp.dot(z_wide.astype(jnp.bfloat16), w_dec_ref[...],
                     preferred_element_type=jnp.float32) + b_dec_ref[...]
    recon_ref[...] = jax.nn.sigmoid(logits).astype(recon_ref.dtype)


def vae_forward(x_nchw, params, eps, *, tb=None):
    """x_nchw: (B, C, H, W) float32. Returns (recon_nchw bf16, mu f32, logvar f32)."""
    B, C, H, W = x_nchw.shape
    D = C * H * W
    R = eps.shape[-1]
    two_r = 2 * R
    D_pad = 128 * pl.cdiv(D, 128)

    # bf16 activations in; pad D to a lane-dense multiple of 128 (no-op when aligned).
    x_flat = x_nchw.reshape(B, D).astype(jnp.bfloat16)
    w_enc = params["w_enc"]   # (D, 2R) bf16
    b_enc = params["b_enc"]   # (1, 2R) f32
    w_dec = params["w_dec"]   # (R, D)  bf16
    b_dec = params["b_dec"]   # (1, D)  f32
    if D_pad != D:
        x_flat = jnp.pad(x_flat, ((0, 0), (0, D_pad - D)))
        w_enc = jnp.pad(w_enc, ((0, D_pad - D), (0, 0)))
        b_dec = jnp.pad(b_dec, ((0, 0), (0, D_pad - D)))
    # Decoder weight: pad K from R -> 2R with zero rows (kills the logvar lanes of
    # z_wide) and N from D -> D_pad; eps padded with zero lanes [R:2R).
    w_dec_full = jnp.pad(w_dec, ((0, R), (0, D_pad - D)))
    eps_wide = jnp.pad(eps.astype(jnp.float32), ((0, 0), (0, R)))

    # Batch tile (sublane-aligned). >= 2 grid steps for large B keeps both v7x TCs busy;
    # 256 rows fill the v6e/v7x 256-wide MXU M dim; 128 saturates v5e's MXU.
    if tb is None:
        if B <= 128:
            tb = B
        elif B < 512:
            tb = 128
        else:
            tb = 256
    grid = (pl.cdiv(B, tb),)

    # VMEM budget from the real footprint (double-buffered tiles + weights), capped for
    # v7x's 64 MiB physical VMEM.
    n_buf = 2  # BlockSpec double-buffers every operand (pinned weights too; see TODO)
    tile_bytes = n_buf * (tb * D_pad * 2 + tb * two_r * 4 + tb * D_pad * 2 + tb * two_r * 4)
    weight_bytes = n_buf * (D_pad * two_r * 2 + two_r * 4 + two_r * D_pad * 2 + D_pad * 4)
    vmem_limit = max(min(int(1.5 * (tile_bytes + weight_bytes)) + (2 << 20), 48 << 20),
                     32 << 20)

    cost = pl.CostEstimate(
        flops=2 * B * D_pad * two_r + 2 * B * two_r * D_pad,
        transcendentals=B * (two_r + D_pad),
        bytes_accessed=(B * D_pad * 2 + D_pad * two_r * 2 + two_r * 4 + B * two_r * 4
                        + two_r * D_pad * 2 + D_pad * 4 + B * D_pad * 2 + B * two_r * 4),
    )

    recon, mulv = pl.pallas_call(
        vae_forward_kernel,
        out_shape=(
            jax.ShapeDtypeStruct((B, D_pad), jnp.bfloat16),   # recon (bf16 writeback)
            jax.ShapeDtypeStruct((B, two_r), jnp.float32),    # [mu | logvar] slab
        ),
        grid=grid,
        in_specs=[
            pl.BlockSpec((tb, D_pad), lambda i: (i, 0)),      # x tile (pipelined over batch)
            pl.BlockSpec((D_pad, two_r), lambda i: (0, 0)),   # fused encoder weight (pinned)
            pl.BlockSpec((1, two_r), lambda i: (0, 0)),       # fused encoder bias
            pl.BlockSpec((tb, two_r), lambda i: (i, 0)),      # eps (zero-padded, lane-dense)
            pl.BlockSpec((two_r, D_pad), lambda i: (0, 0)),   # decoder weight (zero-row padded)
            pl.BlockSpec((1, D_pad), lambda i: (0, 0)),       # decoder bias
        ],
        out_specs=(
            pl.BlockSpec((tb, D_pad), lambda i: (i, 0)),      # recon (lane-dense)
            pl.BlockSpec((tb, two_r), lambda i: (i, 0)),      # [mu | logvar] (lane-dense)
        ),
        compiler_params=pltpu.CompilerParams(
            dimension_semantics=("parallel",),                # shard batch tiles across TCs
            vmem_limit_bytes=vmem_limit,
        ),
        cost_estimate=cost,
    )(x_flat, w_enc, b_enc, eps_wide, w_dec_full, b_dec)

    mu = mulv[:, :R]
    logvar = mulv[:, R:]
    recon_nchw = recon[:, :D].reshape(B, C, H, W)   # bf16; upcast downstream if f32 needed
    return recon_nchw, mu, logvar


def init_params(key, D, R):
    k1, k2, k3 = jax.random.split(key, 3)
    s_enc = 1.0 / jnp.sqrt(jnp.float32(D))
    s_dec = 1.0 / jnp.sqrt(jnp.float32(R))
    w_mu = s_enc * jax.random.normal(k1, (D, R), jnp.float32)
    w_lv = s_enc * jax.random.normal(k2, (D, R), jnp.float32)
    w_dec = s_dec * jax.random.normal(k3, (R, D), jnp.float32)
    return {
        # Fused encoder heads: [W_mu | W_logvar] -> (D, 2R); bf16 for MXU streaming.
        "w_enc": jnp.concatenate([w_mu, w_lv], axis=1).astype(jnp.bfloat16),
        "b_enc": jnp.zeros((1, 2 * R), jnp.float32),
        "w_dec": w_dec.astype(jnp.bfloat16),
        "b_dec": jnp.zeros((1, D), jnp.float32),
    }


if __name__ == "__main__":
    key = jax.random.PRNGKey(0)
    k_x, k_p, k_eps = jax.random.split(key, 3)

    # Small shapes consistent with the module: batch=8, channels=1, spatial=16, rank=64.
    # 2R = 128 -> lane-dense fused encoder output; D = 256 -> lane-dense decoder output.
    B, C, H, W, R = 8, 1, 16, 16, 64
    D = C * H * W

    x = jax.random.uniform(k_x, (B, C, H, W), jnp.float32)   # image-like input in [0,1)
    params = init_params(k_p, D, R)
    # eps is passed in (rather than drawn in-kernel with pltpu.prng_*) so the run is
    # deterministic and directly checkable against a pure-JAX reference.
    eps = jax.random.normal(k_eps, (B, R), jnp.float32)       # torch.randn_like(std)

    fwd = jax.jit(vae_forward)
    recon, mu, logvar = fwd(x, params, eps)
    jax.block_until_ready((recon, mu, logvar))

    # Pure-JAX reference of the same math (same bf16 matmul operands, f32 accumulation).
    x_bf = x.reshape(B, D).astype(jnp.bfloat16)
    enc_ref = jnp.dot(x_bf, params["w_enc"],
                      preferred_element_type=jnp.float32) + params["b_enc"]
    mu_ref = enc_ref[:, :R]
    lv_ref = enc_ref[:, R:]
    z_ref = mu_ref + eps * jnp.exp(0.5 * lv_ref)
    rec_ref = jax.nn.sigmoid(
        jnp.dot(z_ref.astype(jnp.bfloat16), params["w_dec"],
                preferred_element_type=jnp.float32) + params["b_dec"]
    ).reshape(B, C, H, W)

    assert recon.dtype == jnp.bfloat16
    assert jnp.allclose(recon.astype(jnp.float32), rec_ref, atol=1e-2, rtol=1e-2)
    assert jnp.allclose(mu, mu_ref, atol=2e-3, rtol=2e-3)
    assert jnp.allclose(logvar, lv_ref, atol=2e-3, rtol=2e-3)

    print("KERNEL_OK")
</pallas_src>

<mosaic_0001>
module attributes {stable_mosaic.version = 11 : i64} {
  func.func @vae_forward_kernel(%arg0: i32, %arg1: memref<8x256xbf16, #tpu.memory_space<vmem>>, %arg2: memref<256x128xbf16, #tpu.memory_space<vmem>>, %arg3: memref<1x128xf32, #tpu.memory_space<vmem>>, %arg4: memref<8x128xf32, #tpu.memory_space<vmem>>, %arg5: memref<128x256xbf16, #tpu.memory_space<vmem>>, %arg6: memref<1x256xf32, #tpu.memory_space<vmem>>, %arg7: memref<8x256xbf16, #tpu.memory_space<vmem>>, %arg8: memref<8x128xf32, #tpu.memory_space<vmem>>) attributes {dimension_semantics = [#tpu.dimension_semantics<parallel>], iteration_bounds = array<i64: 1>, scalar_prefetch = 0 : i64, scratch_operands = 0 : i64, tpu.core_type = #tpu.core_type<tc>, window_params = [{transform_indices = @transform_0, window_bounds = array<i64: 8, 256>}, {pipeline_mode = #tpu.pipeline_mode<synchronous>, transform_indices = @transform_1, window_bounds = array<i64: 256, 128>}, {pipeline_mode = #tpu.pipeline_mode<synchronous>, transform_indices = @transform_2, window_bounds = array<i64: 1, 128>}, {transform_indices = @transform_3, window_bounds = array<i64: 8, 128>}, {pipeline_mode = #tpu.pipeline_mode<synchronous>, transform_indices = @transform_4, window_bounds = array<i64: 128, 256>}, {pipeline_mode = #tpu.pipeline_mode<synchronous>, transform_indices = @transform_5, window_bounds = array<i64: 1, 256>}, {transform_indices = @transform_6, window_bounds = array<i64: 8, 256>}, {transform_indices = @transform_7, window_bounds = array<i64: 8, 128>}]} {
    %c0 = arith.constant 0 : index
    %c0_0 = arith.constant 0 : index
    %0 = vector.load %arg1[%c0, %c0_0] : memref<8x256xbf16, #tpu.memory_space<vmem>>, vector<8x256xbf16>
    %c0_1 = arith.constant 0 : index
    %c0_2 = arith.constant 0 : index
    %1 = vector.load %arg2[%c0_1, %c0_2] : memref<256x128xbf16, #tpu.memory_space<vmem>>, vector<256x128xbf16>
    %cst = arith.constant dense<0.000000e+00> : vector<8x128xf32>
    %2 = tpu.matmul %0, %1, %cst {dimension_numbers = #tpu.dot_dimension_numbers<[1], [0], [0], [1], [0, 0, 1, 1], [], []>} : vector<8x256xbf16>, vector<256x128xbf16>, vector<8x128xf32> -> vector<8x128xf32>
    %c0_3 = arith.constant 0 : index
    %c0_4 = arith.constant 0 : index
    %3 = vector.load %arg3[%c0_3, %c0_4] : memref<1x128xf32, #tpu.memory_space<vmem>>, vector<1x128xf32>
    %4 = vector.broadcast %3 : vector<1x128xf32> to vector<8x128xf32>
    %5 = arith.addf %2, %4 : vector<8x128xf32>
    %c0_5 = arith.constant 0 : index
    %c0_6 = arith.constant 0 : index
    %6 = vector.load %arg8[%c0_5, %c0_6] : memref<8x128xf32, #tpu.memory_space<vmem>>, vector<8x128xf32>
    tpu.vector_store %arg8[%c0_5, %c0_6], %5 {strides = array<i32>} : memref<8x128xf32, #tpu.memory_space<vmem>>, vector<8x128xf32>,
    %c64_i32 = arith.constant 64 : i32
    %7 = tpu.dynamic_rotate %5 by %c64_i32 dim 1 : vector<8x128xf32>, i32 -> vector<8x128xf32>
    %8 = tpu.iota {dimensions = array<i32: 1>} : vector<8x128xi32>
    %c64_i32_7 = arith.constant 64 : i32
    %9 = vector.broadcast %c64_i32_7 : i32 to vector<8x128xi32>
    %10 = arith.cmpi slt, %8, %9 : vector<8x128xi32>
    %cst_8 = arith.constant 5.000000e-01 : f32
    %11 = vector.broadcast %cst_8 : f32 to vector<8x128xf32>
    %12 = arith.mulf %11, %7 : vector<8x128xf32>
    %cst_9 = arith.constant 0.000000e+00 : f32
    %13 = vector.broadcast %cst_9 : f32 to vector<8x128xf32>
    %14 = arith.select %10, %12, %13 : vector<8x128xi1>, vector<8x128xf32>
    %15 = math.exp %14 : vector<8x128xf32>
    %c0_10 = arith.constant 0 : index
    %c0_11 = arith.constant 0 : index
    %16 = vector.load %arg4[%c0_10, %c0_11] : memref<8x128xf32, #tpu.memory_space<vmem>>, vector<8x128xf32>
    %17 = arith.mulf %16, %15 : vector<8x128xf32>
    %18 = arith.addf %5, %17 : vector<8x128xf32>
    %19 = arith.truncf %18 : vector<8x128xf32> to vector<8x128xbf16>
    %c0_12 = arith.constant 0 : index
    %c0_13 = arith.constant 0 : index
    %20 = vector.load %arg5[%c0_12, %c0_13] : memref<128x256xbf16, #tpu.memory_space<vmem>>, vector<128x256xbf16>
    %cst_14 = arith.constant dense<0.000000e+00> : vector<8x256xf32>
    %21 = tpu.matmul %19, %20, %cst_14 {dimension_numbers = #tpu.dot_dimension_numbers<[1], [0], [0], [1], [0, 0, 1, 1], [], []>} : vector<8x128xbf16>, vector<128x256xbf16>, vector<8x256xf32> -> vector<8x256xf32>
    %c0_15 = arith.constant 0 : index
    %c0_16 = arith.constant 0 : index
    %22 = vector.load %arg6[%c0_15, %c0_16] : memref<1x256xf32, #tpu.memory_space<vmem>>, vector<1x256xf32>
    %23 = vector.broadcast %22 : vector<1x256xf32> to vector<8x256xf32>
    %24 = arith.addf %21, %23 : vector<8x256xf32>
    %25 = arith.negf %24 : vector<8x256xf32>
    %26 = math.exp %25 : vector<8x256xf32>
    %cst_17 = arith.constant 1.000000e+00 : f32
    %27 = vector.broadcast %cst_17 : f32 to vector<8x256xf32>
    %28 = arith.addf %27, %26 : vector<8x256xf32>
    %29 = arith.divf %27, %28 : vector<8x256xf32>
    %30 = arith.truncf %29 : vector<8x256xf32> to vector<8x256xbf16>
    %c0_18 = arith.constant 0 : index
    %c0_19 = arith.constant 0 : index
    %31 = vector.load %arg7[%c0_18, %c0_19] : memref<8x256xbf16, #tpu.memory_space<vmem>>, vector<8x256xbf16>
    tpu.vector_store %arg7[%c0_18, %c0_19], %30 {strides = array<i32>} : memref<8x256xbf16, #tpu.memory_space<vmem>>, vector<8x256xbf16>,
    return
  }
  func.func @transform_0(%arg0: i32) -> (i32, i32) {
    %c0_i32 = arith.constant 0 : i32
    %c0_i32_0 = arith.constant 0 : i32
    return %arg0, %c0_i32 : i32, i32
  }
  func.func @transform_1(%arg0: i32) -> (i32, i32) {
    %c0_i32 = arith.constant 0 : i32
    %c0_i32_0 = arith.constant 0 : i32
    %c0_i32_1 = arith.constant 0 : i32
    return %c0_i32, %c0_i32_0 : i32, i32
  }
  func.func @transform_2(%arg0: i32) -> (i32, i32) {
    %c0_i32 = arith.constant 0 : i32
    %c0_i32_0 = arith.constant 0 : i32
    %c0_i32_1 = arith.constant 0 : i32
    return %c0_i32, %c0_i32_0 : i32, i32
  }
  func.func @transform_3(%arg0: i32) -> (i32, i32) {
    %c0_i32 = arith.constant 0 : i32
    %c0_i32_0 = arith.constant 0 : i32
    return %arg0, %c0_i32 : i32, i32
  }
  func.func @transform_4(%arg0: i32) -> (i32, i32) {
    %c0_i32 = arith.constant 0 : i32
    %c0_i32_0 = arith.constant 0 : i32
    %c0_i32_1 = arith.constant 0 : i32
    return %c0_i32, %c0_i32_0 : i32, i32
  }
  func.func @transform_5(%arg0: i32) -> (i32, i32) {
    %c0_i32 = arith.constant 0 : i32
    %c0_i32_0 = arith.constant 0 : i32
    %c0_i32_1 = arith.constant 0 : i32
    return %c0_i32, %c0_i32_0 : i32, i32
  }
  func.func @transform_6(%arg0: i32) -> (i32, i32) {
    %c0_i32 = arith.constant 0 : i32
    %c0_i32_0 = arith.constant 0 : i32
    return %arg0, %c0_i32 : i32, i32
  }
  func.func @transform_7(%arg0: i32) -> (i32, i32) {
    %c0_i32 = arith.constant 0 : i32
    %c0_i32_0 = arith.constant 0 : i32
    return %arg0, %c0_i32 : i32, i32
  }
}

</mosaic_0001>

<bundles_post_ra>
// kernel: vae_forward.1
= control target key start
LH: loop header
LB: loop body
LE: loop exit
PB: predicated region body
PF: predicated region fallthrough
CT: control target
= control target key end

     0   :  { %v516_v33 = vmov 0   ;;  %v212_v43 = vlaneseq  ;;  %s672_s1 = inlined_call_operand.vmem [shape: bf16[256,128], index: 1, kind: input, shape index: {}]   ;;  %s673_s0 = inlined_call_operand.vmem [shape: bf16[8,256], index: 0, kind: input, shape index: {}]   ;;  %s674_s4 = inlined_call_operand.vmem [shape: bf16[128,256], index: 4, kind: input, shape index: {}]   ;;  %s675_s2 = inlined_call_operand.vmem [shape: f32[1,128], index: 2, kind: input, shape index: {}]   ;;  %s676_s7 = inlined_call_operand.vmem [shape: f32[8,128], index: 7, kind: output, shape index: {1}]   ;;  %s677_s3 = inlined_call_operand.vmem [shape: f32[8,128], index: 3, kind: input, shape index: {}]   ;;  %s678_s5 = inlined_call_operand.vmem [shape: f32[1,256], index: 5, kind: input, shape index: {}]   ;;  %s679_s6 = inlined_call_operand.vmem [shape: bf16[8,256], index: 6, kind: output, shape index: {0}]  }
   0x1   :  { %v464_v0 = vld [vmem:[%s672_s1 + $0x78] sm:$0xff]   ;;  %v466_v2 = vld [vmem:[%s672_s1 + $0x70] sm:$0xff]   ;;  %v468_v4 = vld [vmem:[%s672_s1 + $0x68] sm:$0xff]   ;;  %363 = vmatprep.mubr.bf16.mxu1 %v516_v33 }
   0x2   :  { %v465_v1 = vld [vmem:[%s672_s1 + $0x38] sm:$0xff]   ;;  %440 = vmatprep.subr.bf16.mxu0 %v464_v0  ;;  %v467_v3 = vld [vmem:[%s672_s1 + $0x30] sm:$0xff]   ;;  %v469_v5 = vld [vmem:[%s672_s1 + $0x28] sm:$0xff]   ;;  %v213_v44 = vand.u32 127, %v212_v43  ;;  %v242_v54 = vshrl.u32 %v212_v43, 7 }
   0x3   :  { %441 = vmatpush3.bf16.msra.mxu0 %v465_v1  ;;  %v470_v6 = vld [vmem:[%s672_s1 + $0x60] sm:$0xff]   ;;  %v472_v8 = vld [vmem:[%s672_s1 + $0x58] sm:$0xff]   ;;  %v474_v10 = vld [vmem:[%s672_s1 + $0x50] sm:$0xff]  }
   0x4   :  { %442 = vmatprep.subr.bf16.mxu0 %v466_v2  ;;  %v471_v7 = vld [vmem:[%s672_s1 + $0x20] sm:$0xff]   ;;  %v473_v9 = vld [vmem:[%s672_s1 + $0x18] sm:$0xff]   ;;  %v475_v13 = vld [vmem:[%s672_s1 + $0x10] sm:$0xff]   ;;  %vm214_vm0 = vcmp.lt.s32.totalorder %v213_v44, 64  ;;  %v243_v55 = vsub.s32 0, %v242_v54  ;;  %v247_v57 = vsub.s32 1, %v242_v54 }
   0x5   :  { %v26_v11 = vld [vmem:[%s673_s0] sm:$0xff]  ;;  %v476_v14 = vld [vmem:[%s672_s1 + $0x48] sm:$0xff]   ;;  %v482_v19 = vld [vmem:[%s674_s4 + $0x74] ss:$8 sps:$4 sm:$0xff]  }
   0x6   :  { %v403_v12 = vcombine.high %v26_v11, %v26_v11  ;;  %v477_v15 = vld [vmem:[%s672_s1 + $0x8] sm:$0xff]   ;;  %v478_v16 = vld [vmem:[%s672_s1 + $0x40] sm:$0xff]   ;;  %v402_v18 = vcombine.low %v26_v11, %v26_v11  ;;  %v484_v20 = vld [vmem:[%s674_s4 + $0x70] ss:$8 sps:$4 sm:$0xff]   ;;  %331 = vmatprep.subr.bf16.mxu1 %v482_v19 }
   0x7   :  { %443 = vmatpush3.bf16.msra.mxu0 %v467_v3  ;;  %v479_v17 = vld [vmem:[%s672_s1] sm:$0xff]   ;;  %332 = vmatpush1.bf16.msra.mxu1 %v484_v20  ;;  %v488_v23 = vld [vmem:[%s674_s4 + $0x54] ss:$8 sps:$4 sm:$0xff]   ;;  %v490_v24 = vld [vmem:[%s674_s4 + $0x50] ss:$8 sps:$4 sm:$0xff]  }
   0x8   :  { %444 = vmatprep.subr.bf16.mxu0 %v468_v4  ;;  %201 = vmatprep.mubr.bf16.mxu0 %v403_v12  ;;  %v485_v21 = vld [vmem:[%s674_s4 + $0x64] ss:$8 sps:$4 sm:$0xff]   ;;  %v487_v22 = vld [vmem:[%s674_s4 + $0x60] ss:$8 sps:$4 sm:$0xff]   ;;  %v494_v27 = vld [vmem:[%s674_s4 + $0x34] ss:$8 sps:$4 sm:$0xff]  }
   0x9   :  { %333 = vmatprep.subr.bf16.mxu1 %v485_v21  ;;  %v491_v25 = vld [vmem:[%s674_s4 + $0x44] ss:$8 sps:$4 sm:$0xff]   ;;  %v493_v26 = vld [vmem:[%s674_s4 + $0x40] ss:$8 sps:$4 sm:$0xff]   ;;  %v496_v29 = vld [vmem:[%s674_s4 + $0x30] ss:$8 sps:$4 sm:$0xff]  }
   0xa   :  { %v497_v30 = vld [vmem:[%s674_s4 + $0x24] ss:$8 sps:$4 sm:$0xff]   ;;  %v401_v31 = vld [vmem:[%s675_s2] ss:$0 sm:$0xff]  ;;  %v500_v38 = vld [vmem:[%s674_s4 + $0x14] ss:$8 sps:$4 sm:$0xff]  }
   0xb   :  { %445 = vmatpush3.bf16.msra.mxu0 %v469_v5  ;;  %334 = vmatpush1.bf16.msra.mxu1 %v487_v22  ;;  %v499_v36 = vld [vmem:[%s674_s4 + $0x20] ss:$8 sps:$4 sm:$0xff]   ;;  %s517_s2 = smov 64   ;;  %v502_v40 = vld [vmem:[%s674_s4 + $0x10] ss:$8 sps:$4 sm:$0xff]  }
   0xc   :  { %446 = vmatprep.subr.bf16.mxu0 %v470_v6  ;;  %335 = vmatprep.subr.bf16.mxu1 %v488_v23  ;;  %v503_v41 = vld [vmem:[%s674_s4 + $0x4] ss:$8 sps:$4 sm:$0xff]   ;;  %v505_v42 = vld [vmem:[%s674_s4] ss:$8 sps:$4 sm:$0xff]  }
   0xd   :  { %v219_v49 = vld [vmem:[%s677_s3] sm:$0xff] }
   0xe   :  { %v239_v56 = vld [vmem:[%s678_s5] sm:$0x3] }
   0xf   :  { %447 = vmatpush3.bf16.msra.mxu0 %v471_v7  ;;  %336 = vmatpush1.bf16.msra.mxu1 %v490_v24  ;;  %v244_v58 = vrot.slane %v239_v56, %v243_v55  ;;  %v248_v59 = vrot.slane %v239_v56, %v247_v57 }
  0x10   :  { %448 = vmatprep.subr.bf16.mxu0 %v472_v8  ;;  %337 = vmatprep.subr.bf16.mxu1 %v491_v25 }
  0x13   :  { %449 = vmatpush3.bf16.msra.mxu0 %v473_v9  ;;  %338 = vmatpush1.bf16.msra.mxu1 %v493_v26 }
  0x14   :  { %450 = vmatprep.subr.bf16.mxu0 %v474_v10  ;;  %339 = vmatprep.subr.bf16.mxu1 %v494_v27 }
  0x17   :  { %451 = vmatpush3.bf16.msra.mxu0 %v475_v13  ;;  %340 = vmatpush1.bf16.msra.mxu1 %v496_v29 }
  0x18   :  { %452 = vmatprep.subr.bf16.mxu0 %v476_v14  ;;  %341 = vmatprep.subr.bf16.mxu1 %v497_v30 }
  0x1b   :  { %453 = vmatpush3.bf16.msra.mxu0 %v477_v15  ;;  %342 = vmatpush1.bf16.msra.mxu1 %v499_v36 }
  0x1c   :  { %454 = vmatprep.subr.bf16.mxu0 %v478_v16  ;;  %343 = vmatprep.subr.bf16.mxu1 %v500_v38 }
  0x1f   :  { %455 = vmatpush3.bf16.msra.mxu0 %v479_v17  ;;  %344 = vmatpush1.bf16.msra.mxu1 %v502_v40 }
  0x20   :  { %345 = vmatprep.subr.bf16.mxu1 %v503_v41 }
  0x22   :  { %202 = vmatmul.mubr.bf16.vlgmr.msra.gmra.mxu0 %v402_v18 }
  0x23   :  { %346 = vmatpush1.bf16.msra.mxu1 %v505_v42 }
  0xe2   :  { %v456_v28 = vpop.f32.mrf.mxu0 }
  0xe4   :  { %v457_v32 = vpop.f32.mrf.mxu0 }
  0xe5   :  { %v458_v34 = vadd.f32 %v457_v32, %v456_v28 }
  0xe6   :  { %v459_v35 = vpop.f32.mrf.mxu0 }
  0xe7   :  { %v204_v37 = vadd.f32 %v458_v34, %v401_v31 }
  0xe8   :  { %v460_v39 = vpop.f32.mrf.mxu0 }
  0xe9   :  { %209 = vst [vmem:[%s676_s7] sm:$0xff] %v204_v37  ;;  %210 = vrot.lane.b32.xlu0 %v204_v37, %s517_s2 }
 0x15b   :  { %v211_v45 = vpop.permute.xlu0 %210 }
 0x15c   :  { %v215_v46 = vmul.f32 0.5, %v211_v45 }
 0x15e   :  { %v216_v47 = vsel %vm214_vm0, %v215_v46, 0.0 }
 0x15f   :  { %v217_v48 = vmul.f32 1.442695, %v216_v47 }
 0x161   :  { %506 = vpow2.f32 %v217_v48 }
 0x16e   :  { %v507_v50 = vpop.eup %506 }
 0x16f   :  { %v220_v51 = vmul.f32 %v507_v50, %v219_v49 }
 0x171   :  { %v221_v52 = vadd.f32 %v220_v51, %v204_v37 }
 0x173   :  { %v222_v53 = vpack.c.bf16 %v221_v52, %v221_v52 }
 0x175   :  { %364 = vmatmul.mubr.bf16.vlgmr.msra.gmra.mxu1 %v222_v53 }
 0x235   :  { %v365_v60 = vpop.f32.mrf.mxu1 }
 0x236   :  { %v366_v61 = vadd.f32 %v365_v60, %v244_v58 }
 0x237   :  { %v367_v62 = vpop.f32.mrf.mxu1 }
 0x238   :  { %v436_v63 = vmul.f32 -1.442695, %v366_v61  ;;  %v368_v0 = vadd.f32 %v367_v62, %v248_v59 }
 0x239   :  { %v369_v1 = vpop.f32.mrf.mxu1 }
 0x23a   :  { %508 = vpow2.f32 %v436_v63  ;;  %v437_v2 = vmul.f32 -1.442695, %v368_v0 }
 0x23b   :  { %v370_v3 = vpop.f32.mrf.mxu1 }
 0x23c   :  { %510 = vpow2.f32 %v437_v2 }
 0x247   :  { %v509_v4 = vpop.eup %508 }
 0x248   :  { %v378_v5 = vadd.f32 1.0, %v509_v4 }
 0x249   :  { %v511_v6 = vpop.eup %510 }
 0x24a   :  { %v379_v7 = vadd.f32 1.0, %v511_v6  ;;  %512 = vrcp.f32 %v378_v5 }
 0x24c   :  { %514 = vrcp.f32 %v379_v7 }
 0x257   :  { %v513_v8 = vpop.eup %512 }
 0x259   :  { %v515_v9 = vpop.eup %514 }
 0x25a   :  { %v439_v10 = vpack.c.bf16 %v515_v9, %v513_v8 }
 0x25c   :  { %392 = vst [vmem:[%s679_s6] sm:$0xff] %v439_v10 }

</bundles_post_ra>
